<compile_context>
chip_gen: v6e
topology: v6e:2x2x1
jax: 0.10.0
libtpu: 0.0.40
codegen_flags: <defaults>
</compile_context>

<pallas_src>
import functools
import math
from typing import NamedTuple

import jax
import jax.numpy as jnp
from jax.experimental import pallas as pl
from jax.experimental.pallas import tpu as pltpu


_INV_SQRT2 = 1.0 / math.sqrt(2.0)


def _gelu_erf(h):
    """Exact (erf) GELU, matching nn.GELU(approximate='none')."""
    return 0.5 * h * (1.0 + jax.lax.erf(h * _INV_SQRT2))


# ----------------------------------------------------------------------------
# Kernels
# ----------------------------------------------------------------------------

def _mlp_kernel_resident(x_ref, w1_ref, b1_ref, w2_ref, b2_ref, o_ref, *,
                         th_chunk, n_chunks, gelu_in_bf16):
    """Weights fully VMEM-resident: one row tile per grid step, no scratch.

    Hidden dim is processed in <=512-wide chunks (fully unrolled straight-line
    code) so matmul of chunk k+1 can overlap the erf-GELU of chunk k.
    """
    x = x_ref[...]
    acc = None
    for c in range(n_chunks):
        lo = c * th_chunk
        h = jnp.dot(x, w1_ref[:, lo:lo + th_chunk],
                    preferred_element_type=jnp.float32)
        h = h + b1_ref[:, lo:lo + th_chunk]           # f32 bias
        if gelu_in_bf16:
            hg = _gelu_erf(h.astype(jnp.bfloat16))    # bf16 VPU (v6e/v7x)
        else:
            hg = _gelu_erf(h)                         # exact-erf f32
        d = jnp.dot(hg.astype(w2_ref.dtype), w2_ref[lo:lo + th_chunk, :],
                    preferred_element_type=jnp.float32)
        acc = d if acc is None else acc + d
    o_ref[...] = (acc + b2_ref[...]).astype(o_ref.dtype)


def _mlp_kernel_stream(x_ref, w1_ref, b1_ref, w2_ref, b2_ref, o_ref, acc_ref, *,
                       th_chunk, n_chunks, gelu_in_bf16):
    """Weights streamed over hidden-dim tiles (grid axis 1, reduction last).

    acc_ref is an f32 VMEM accumulator; bias add + writeback happen on the
    last hidden tile.  Per-tile hidden work is again chunked in-body.
    """
    h_idx = pl.program_id(1)

    @pl.when(h_idx == 0)
    def _():
        acc_ref[...] = jnp.zeros_like(acc_ref)

    x = x_ref[...]
    partial = None
    for c in range(n_chunks):
        lo = c * th_chunk
        h = jnp.dot(x, w1_ref[:, lo:lo + th_chunk],
                    preferred_element_type=jnp.float32)
        h = h + b1_ref[:, lo:lo + th_chunk]
        if gelu_in_bf16:
            hg = _gelu_erf(h.astype(jnp.bfloat16))
        else:
            hg = _gelu_erf(h)
        d = jnp.dot(hg.astype(w2_ref.dtype), w2_ref[lo:lo + th_chunk, :],
                    preferred_element_type=jnp.float32)
        partial = d if partial is None else partial + d
    acc_ref[...] += partial

    @pl.when(h_idx == pl.num_programs(1) - 1)
    def _():
        o_ref[...] = (acc_ref[...] + b2_ref[...]).astype(o_ref.dtype)


# ----------------------------------------------------------------------------
# Planning
# ----------------------------------------------------------------------------

class _Plan(NamedTuple):
    resident: bool       # weights fully VMEM-resident (1-D grid) vs streamed
    tm: int              # row tile
    th: int              # hidden tile (== H when resident)
    th_chunk: int        # in-body hidden chunk width
    n_chunks: int        # th // th_chunk
    single_buf: bool     # pl.Buffered(1) on resident weights/biases
    vmem_limit: int      # vmem_limit_bytes for CompilerParams


_BUFFERED1_OK = None


def _single_buffer_supported():
    """Probe once whether pipeline_mode=pl.Buffered(1) lowers on this JAX/TPU."""
    global _BUFFERED1_OK
    if _BUFFERED1_OK is None:
        try:
            def _probe(a_ref, b_ref, o_ref):
                o_ref[...] = a_ref[...] + b_ref[...]

            f = pl.pallas_call(
                _probe,
                out_shape=jax.ShapeDtypeStruct((8, 128), jnp.float32),
                grid=(2,),
                in_specs=[pl.BlockSpec((8, 128), lambda i: (0, 0)),
                          pl.BlockSpec((8, 128), lambda i: (0, 0),
                                       pipeline_mode=pl.Buffered(1))],
                out_specs=pl.BlockSpec((8, 128), lambda i: (0, 0)),
            )
            r = jax.block_until_ready(
                f(jnp.ones((8, 128), jnp.float32),
                  jnp.full((8, 128), 2.0, jnp.float32)))
            _BUFFERED1_OK = bool(jnp.allclose(r, 3.0))
        except Exception:  # any failure -> fall back to default double buffering
            _BUFFERED1_OK = False
    return _BUFFERED1_OK


def _vmem_budget():
    """Generation-aware VMEM planning budget and compiler limit."""
    try:
        cap = int(pltpu.get_tpu_info().vmem_capacity_bytes)
    except Exception:
        cap = 0
    if cap < 32 * 1024 * 1024:
        cap = 64 * 1024 * 1024           # conservative (v7x-sized) fallback
    budget = cap - 16 * 1024 * 1024      # headroom for compiler temporaries
    limit = cap - 8 * 1024 * 1024
    return budget, limit


def _chunk_of(th):
    """In-body hidden chunk: largest of (512, 384, 256, 128) dividing th."""
    if th % 128 != 0:
        return th
    for c in (512, 384, 256, 128):
        if th % c == 0:
            return c
    return th


def _pick_row_tile(M, target):
    """Row tile: multiple of 16 (bf16 sublane packing), dividing M if possible."""
    if M <= target:
        if M >= 256 and (M // 2) % 16 == 0:
            return M // 2                # >=2 row tiles so both v7x TCs get work
        return M                         # full extent is always a legal block
    for t in range(target, max(128, target // 2) - 1, -16):
        if M % t == 0:
            return t                     # divides M -> no jnp.pad HBM copy
    # TODO(synk): mask the last partial row tile in-kernel instead of padding.
    return target


def _make_plan(M, C, H, out_itemsize, *, single_buf_ok,
               tm_resident=256, tm_stream=512):
    budget, limit = _vmem_budget()
    wmult = 1 if single_buf_ok else 2    # buffers per resident weight block

    def resident_bytes(tm):
        ck = _chunk_of(H)
        return (wmult * 2 * C * H * 2            # W1 + W2 (bf16), resident
                + wmult * (H + C) * 4            # b1 + b2 (f32)
                + 2 * tm * C * 2                 # x tile (bf16, double-buffered)
                + 2 * tm * C * out_itemsize      # out tile (double-buffered)
                + tm * C * 4                     # f32 output accumulation
                + tm * ck * 6)                   # f32 hidden chunk + bf16 copy

    def stream_bytes(tm, th):
        ck = _chunk_of(th)
        return (2 * 2 * C * th * 2 + 2 * 2 * th * C * 2   # W1/W2 tiles, dbl-buf
                + 2 * th * 4 + 2 * C * 4                  # b1 tile, b2
                + 2 * tm * C * 2 + 2 * tm * C * out_itemsize
                + 2 * tm * C * 4                          # acc scratch + partial
                + tm * ck * 6)

    # 1) Fully fused: W1/W2 stay in VMEM across the whole grid (no re-stream).
    tm = _pick_row_tile(M, tm_resident)
    if H % 128 != 0 or resident_bytes(tm) <= budget:
        ck = _chunk_of(H)
        return _Plan(True, tm, H, ck, max(1, H // ck), single_buf_ok, limit)

    # 2) Stream hidden-dim weight tiles.  Arithmetic intensity of this path is
    #    ~tm flop/byte, so use a big row tile; hidden tile = largest multiple
    #    of 128 dividing H whose footprint fits the budget.
    tm = _pick_row_tile(M, tm_stream)
    while True:
        for th in range(H, 127, -128):
            if H % th == 0 and stream_bytes(tm, th) <= budget:
                ck = _chunk_of(th)
                return _Plan(False, tm, th, ck, th // ck, False, limit)
        if tm <= 128:
            break
        tm = _pick_row_tile(M, max(128, tm // 2))

    # Last resort: smallest aligned tiles; the raised vmem limit gives slack.
    tm = min(tm, 128) if M > 128 else M
    ck = _chunk_of(128)
    return _Plan(False, tm, 128, ck, 128 // ck, False, limit)


# ----------------------------------------------------------------------------
# Forward
# ----------------------------------------------------------------------------

@functools.partial(jax.jit, static_argnames=("plan", "gelu_in_bf16"))
def _mlp_forward(x, w1, b1, w2, b2, *, plan, gelu_in_bf16):
    B, T, C = x.shape
    H = w1.shape[1]
    out_dtype = x.dtype
    M = B * T
    tm = plan.tm

    x2 = x.reshape(M, C).astype(jnp.bfloat16)
    M_pad = pl.cdiv(M, tm) * tm
    if M_pad != M:
        x2 = jnp.pad(x2, ((0, M_pad - M), (0, 0)))
    grid_rows = M_pad // tm

    w1c = w1.astype(jnp.bfloat16)
    w2c = w2.astype(jnp.bfloat16)
    b1_2d = b1.reshape(1, H).astype(jnp.float32)
    b2_2d = b2.reshape(1, C).astype(jnp.float32)

    out_itemsize = jnp.dtype(out_dtype).itemsize
    streamed_passes = 1 if plan.resident else grid_rows
    cost = pl.CostEstimate(
        flops=4 * M_pad * C * H,
        transcendentals=M_pad * H,
        bytes_accessed=(M_pad * C * 2 + M_pad * C * out_itemsize
                        + streamed_passes * 2 * C * H * 2 + (H + C) * 4),
    )
    cparams = pltpu.CompilerParams(
        dimension_semantics=("parallel",) if plan.resident
        else ("parallel", "arbitrary"),
        vmem_limit_bytes=plan.vmem_limit,
    )

    if plan.resident:
        # Resident weights never change block index; single-buffer when supported.
        res_kw = {"pipeline_mode": pl.Buffered(1)} if plan.single_buf else {}
        kernel = functools.partial(
            _mlp_kernel_resident, th_chunk=plan.th_chunk,
            n_chunks=plan.n_chunks, gelu_in_bf16=gelu_in_bf16)
        out = pl.pallas_call(
            kernel,
            out_shape=jax.ShapeDtypeStruct((M_pad, C), out_dtype),
            grid_spec=pltpu.PrefetchScalarGridSpec(
                num_scalar_prefetch=0,
                grid=(grid_rows,),
                in_specs=[
                    pl.BlockSpec((tm, C), lambda i: (i, 0)),
                    pl.BlockSpec((C, H), lambda i: (0, 0), **res_kw),
                    pl.BlockSpec((1, H), lambda i: (0, 0), **res_kw),
                    pl.BlockSpec((H, C), lambda i: (0, 0), **res_kw),
                    pl.BlockSpec((1, C), lambda i: (0, 0), **res_kw),
                ],
                out_specs=pl.BlockSpec((tm, C), lambda i: (i, 0)),
            ),
            compiler_params=cparams,
            cost_estimate=cost,
        )(x2, w1c, b1_2d, w2c, b2_2d)
    else:
        th = plan.th
        n_h = H // th

        def h_of(i, h):
            # Serpentine traversal: odd row tiles walk the hidden axis backwards
            # so the first weight tile of row tile i+1 == last tile of row tile
            # i (one W1+W2 DMA elided per row tile).
            return jnp.where(i % 2 == 0, h, n_h - 1 - h)

        kernel = functools.partial(
            _mlp_kernel_stream, th_chunk=plan.th_chunk,
            n_chunks=plan.n_chunks, gelu_in_bf16=gelu_in_bf16)
        out = pl.pallas_call(
            kernel,
            out_shape=jax.ShapeDtypeStruct((M_pad, C), out_dtype),
            grid_spec=pltpu.PrefetchScalarGridSpec(
                num_scalar_prefetch=0,
                grid=(grid_rows, n_h),               # reduction (hidden) axis last
                in_specs=[
                    pl.BlockSpec((tm, C), lambda i, h: (i, 0)),
                    pl.BlockSpec((C, th), lambda i, h: (0, h_of(i, h))),
                    pl.BlockSpec((1, th), lambda i, h: (0, h_of(i, h))),
                    pl.BlockSpec((th, C), lambda i, h: (h_of(i, h), 0)),
                    pl.BlockSpec((1, C), lambda i, h: (0, 0)),
                ],
                out_specs=pl.BlockSpec((tm, C), lambda i, h: (i, 0)),
                scratch_shapes=[pltpu.VMEM((tm, C), jnp.float32)],
            ),
            compiler_params=cparams,
            cost_estimate=cost,
        )(x2, w1c, b1_2d, w2c, b2_2d)

    return out[:M].reshape(B, T, C)


def mlp_pallas(x, w1, b1, w2, b2, *, gelu_in_bf16=False):
    """Fused nanoGPT MLP forward: c_proj(gelu_exact(c_fc(x))).

    x: (B, T, C).  w1: (C, 4C), b1: (4C,), w2: (4C, C), b2: (C,).
    Weights are (in_features, out_features), i.e. nn.Linear.weight transposed.
    gelu_in_bf16=True trades exact-f32 erf numerics for ~2x VPU throughput on
    v6e/v7x (keep False on v5e or when bit-matching the f32 recipe).
    """
    B, T, C = x.shape
    H = w1.shape[1]
    plan = _make_plan(B * T, C, H, jnp.dtype(x.dtype).itemsize,
                      single_buf_ok=_single_buffer_supported())
    return _mlp_forward(x, w1, b1, w2, b2, plan=plan, gelu_in_bf16=gelu_in_bf16)


# ----------------------------------------------------------------------------
# References + self-test
# ----------------------------------------------------------------------------

def _reference_mlp_f32(x, w1, b1, w2, b2):
    h = jnp.einsum("btc,ch->bth", x, w1) + b1
    h = _gelu_erf(h)
    return jnp.einsum("bth,hc->btc", h, w2) + b2


def _reference_mlp_matched(x, w1, b1, w2, b2):
    """Same bf16-input / f32-accumulate recipe as the kernel."""
    B, T, C = x.shape
    xc = x.reshape(-1, C).astype(jnp.bfloat16)
    h = jnp.dot(xc, w1.astype(jnp.bfloat16),
                preferred_element_type=jnp.float32) + b1
    h = _gelu_erf(h)
    o = jnp.dot(h.astype(jnp.bfloat16), w2.astype(jnp.bfloat16),
                preferred_element_type=jnp.float32) + b2
    return o.reshape(B, T, C).astype(x.dtype)


def _init_and_check(key, B, T, C):
    H = 4 * C
    kx, k1, kb1, k2, kb2 = jax.random.split(key, 5)
    x = jax.random.normal(kx, (B, T, C), dtype=jnp.float32)
    # Deterministic init mimicking nn.Linear's uniform(-1/sqrt(fan_in), ...).
    lim1 = 1.0 / math.sqrt(C)
    lim2 = 1.0 / math.sqrt(H)
    w1 = jax.random.uniform(k1, (C, H), minval=-lim1, maxval=lim1, dtype=jnp.float32)
    b1 = jax.random.uniform(kb1, (H,), minval=-lim1, maxval=lim1, dtype=jnp.float32)
    w2 = jax.random.uniform(k2, (H, C), minval=-lim2, maxval=lim2, dtype=jnp.float32)
    b2 = jax.random.uniform(kb2, (C,), minval=-lim2, maxval=lim2, dtype=jnp.float32)

    y = mlp_pallas(x, w1, b1, w2, b2)
    jax.block_until_ready(y)
    assert y.shape == (B, T, C)

    # Tight check vs a reference using the same bf16-matmul / f32-acc recipe.
    y_matched = _reference_mlp_matched(x, w1, b1, w2, b2)
    assert jnp.allclose(y, y_matched, atol=2e-3, rtol=2e-3), "mismatch vs matched ref"
    # Sanity check vs the pure-f32 reference (bf16 quantization tolerance).
    y_f32 = _reference_mlp_f32(x, w1, b1, w2, b2)
    assert jnp.allclose(y, y_f32, atol=1e-1, rtol=1e-1), "mismatch vs f32 ref"


if __name__ == "__main__":
    key = jax.random.PRNGKey(0)
    k0, k1 = jax.random.split(key)
    # Config implied by the module: n_embd=32 (hidden 4*32=128), batch=2, seq=8.
    _init_and_check(k0, B=2, T=8, C=32)
    # Slightly larger lane-dense config (C=128, hidden 512), same resident path.
    _init_and_check(k1, B=2, T=64, C=128)
    print("KERNEL_OK")
</pallas_src>

<mosaic_0001>
module attributes {stable_mosaic.version = 11 : i64} {
  func.func @_probe(%arg0: i32, %arg1: memref<8x128xf32, #tpu.memory_space<vmem>>, %arg2: memref<8x128xf32, #tpu.memory_space<vmem>>, %arg3: memref<8x128xf32, #tpu.memory_space<vmem>>) attributes {dimension_semantics = [#tpu.dimension_semantics<arbitrary>], iteration_bounds = array<i64: 2>, scalar_prefetch = 0 : i64, scratch_operands = 0 : i64, tpu.core_type = #tpu.core_type<tc>, window_params = [{pipeline_mode = #tpu.pipeline_mode<synchronous>, transform_indices = @transform_0, window_bounds = array<i64: 8, 128>}, {pipeline_mode = #tpu.pipeline_mode<synchronous>, transform_indices = @transform_1, window_bounds = array<i64: 8, 128>}, {pipeline_mode = #tpu.pipeline_mode<synchronous>, transform_indices = @transform_2, window_bounds = array<i64: 8, 128>}]} {
    %c0 = arith.constant 0 : index
    %c0_0 = arith.constant 0 : index
    %0 = vector.load %arg1[%c0, %c0_0] : memref<8x128xf32, #tpu.memory_space<vmem>>, vector<8x128xf32>
    %c0_1 = arith.constant 0 : index
    %c0_2 = arith.constant 0 : index
    %1 = vector.load %arg2[%c0_1, %c0_2] : memref<8x128xf32, #tpu.memory_space<vmem>>, vector<8x128xf32>
    %2 = arith.addf %0, %1 : vector<8x128xf32>
    %c0_3 = arith.constant 0 : index
    %c0_4 = arith.constant 0 : index
    %3 = vector.load %arg3[%c0_3, %c0_4] : memref<8x128xf32, #tpu.memory_space<vmem>>, vector<8x128xf32>
    tpu.vector_store %arg3[%c0_3, %c0_4], %2 {strides = array<i32>} : memref<8x128xf32, #tpu.memory_space<vmem>>, vector<8x128xf32>,
    return
  }
  func.func @transform_0(%arg0: i32) -> (i32, i32) {
    %c0_i32 = arith.constant 0 : i32
    %c0_i32_0 = arith.constant 0 : i32
    %c0_i32_1 = arith.constant 0 : i32
    return %c0_i32, %c0_i32_0 : i32, i32
  }
  func.func @transform_1(%arg0: i32) -> (i32, i32) {
    %c0_i32 = arith.constant 0 : i32
    %c0_i32_0 = arith.constant 0 : i32
    %c0_i32_1 = arith.constant 0 : i32
    return %c0_i32, %c0_i32_0 : i32, i32
  }
  func.func @transform_2(%arg0: i32) -> (i32, i32) {
    %c0_i32 = arith.constant 0 : i32
    %c0_i32_0 = arith.constant 0 : i32
    %c0_i32_1 = arith.constant 0 : i32
    return %c0_i32, %c0_i32_0 : i32, i32
  }
}

module attributes {stable_mosaic.version = 11 : i64} {
  func.func @_mlp_kernel_resident(%arg0: i32, %arg1: memref<16x32xbf16, #tpu.memory_space<vmem>>, %arg2: memref<32x128xbf16, #tpu.memory_space<vmem>>, %arg3: memref<1x128xf32, #tpu.memory_space<vmem>>, %arg4: memref<128x32xbf16, #tpu.memory_space<vmem>>, %arg5: memref<1x32xf32, #tpu.memory_space<vmem>>, %arg6: memref<16x32xf32, #tpu.memory_space<vmem>>) attributes {dimension_semantics = [#tpu.dimension_semantics<parallel>], iteration_bounds = array<i64: 1>, scalar_prefetch = 0 : i64, scratch_operands = 0 : i64, tpu.core_type = #tpu.core_type<tc>, window_params = [{transform_indices = @transform_0, window_bounds = array<i64: 16, 32>}, {pipeline_mode = #tpu.pipeline_mode<synchronous>, transform_indices = @transform_1, window_bounds = array<i64: 32, 128>}, {pipeline_mode = #tpu.pipeline_mode<synchronous>, transform_indices = @transform_2, window_bounds = array<i64: 1, 128>}, {pipeline_mode = #tpu.pipeline_mode<synchronous>, transform_indices = @transform_3, window_bounds = array<i64: 128, 32>}, {pipeline_mode = #tpu.pipeline_mode<synchronous>, transform_indices = @transform_4, window_bounds = array<i64: 1, 32>}, {transform_indices = @transform_5, window_bounds = array<i64: 16, 32>}]} {
    %c0 = arith.constant 0 : index
    %c0_0 = arith.constant 0 : index
    %0 = vector.load %arg1[%c0, %c0_0] : memref<16x32xbf16, #tpu.memory_space<vmem>>, vector<16x32xbf16>
    %c0_1 = arith.constant 0 : index
    %c0_2 = arith.constant 0 : index
    %1 = vector.load %arg2[%c0_1, %c0_2] : memref<32x128xbf16, #tpu.memory_space<vmem>>, vector<32x128xbf16>
    %cst = arith.constant dense<0.000000e+00> : vector<16x128xf32>
    %2 = tpu.matmul %0, %1, %cst {dimension_numbers = #tpu.dot_dimension_numbers<[1], [0], [0], [1], [0, 0, 1, 1], [], []>} : vector<16x32xbf16>, vector<32x128xbf16>, vector<16x128xf32> -> vector<16x128xf32>
    %c0_3 = arith.constant 0 : index
    %c0_4 = arith.constant 0 : index
    %3 = vector.load %arg3[%c0_3, %c0_4] : memref<1x128xf32, #tpu.memory_space<vmem>>, vector<1x128xf32>
    %4 = vector.broadcast %3 : vector<1x128xf32> to vector<16x128xf32>
    %5 = arith.addf %2, %4 : vector<16x128xf32>
    %cst_5 = arith.constant 5.000000e-01 : f32
    %6 = vector.broadcast %cst_5 : f32 to vector<16x128xf32>
    %7 = arith.mulf %6, %5 : vector<16x128xf32>
    %cst_6 = arith.constant 0.707106769 : f32
    %8 = vector.broadcast %cst_6 : f32 to vector<16x128xf32>
    %9 = arith.mulf %5, %8 : vector<16x128xf32>
    %10 = math.erf %9 : vector<16x128xf32>
    %cst_7 = arith.constant 1.000000e+00 : f32
    %11 = vector.broadcast %cst_7 : f32 to vector<16x128xf32>
    %12 = arith.addf %11, %10 : vector<16x128xf32>
    %13 = arith.mulf %7, %12 : vector<16x128xf32>
    %14 = arith.truncf %13 : vector<16x128xf32> to vector<16x128xbf16>
    %c0_8 = arith.constant 0 : index
    %c0_9 = arith.constant 0 : index
    %15 = vector.load %arg4[%c0_8, %c0_9] : memref<128x32xbf16, #tpu.memory_space<vmem>>, vector<128x32xbf16>
    %cst_10 = arith.constant dense<0.000000e+00> : vector<16x32xf32>
    %16 = tpu.matmul %14, %15, %cst_10 {dimension_numbers = #tpu.dot_dimension_numbers<[1], [0], [0], [1], [0, 0, 1, 1], [], []>} : vector<16x128xbf16>, vector<128x32xbf16>, vector<16x32xf32> -> vector<16x32xf32>
    %c0_11 = arith.constant 0 : index
    %c0_12 = arith.constant 0 : index
    %17 = vector.load %arg5[%c0_11, %c0_12] : memref<1x32xf32, #tpu.memory_space<vmem>>, vector<1x32xf32>
    %18 = vector.broadcast %17 : vector<1x32xf32> to vector<16x32xf32>
    %19 = arith.addf %16, %18 : vector<16x32xf32>
    %c0_13 = arith.constant 0 : index
    %c0_14 = arith.constant 0 : index
    %20 = vector.load %arg6[%c0_13, %c0_14] : memref<16x32xf32, #tpu.memory_space<vmem>>, vector<16x32xf32>
    tpu.vector_store %arg6[%c0_13, %c0_14], %19 {strides = array<i32>} : memref<16x32xf32, #tpu.memory_space<vmem>>, vector<16x32xf32>,
    return
  }
  func.func @transform_0(%arg0: i32) -> (i32, i32) {
    %c0_i32 = arith.constant 0 : i32
    %c0_i32_0 = arith.constant 0 : i32
    return %arg0, %c0_i32 : i32, i32
  }
  func.func @transform_1(%arg0: i32) -> (i32, i32) {
    %c0_i32 = arith.constant 0 : i32
    %c0_i32_0 = arith.constant 0 : i32
    %c0_i32_1 = arith.constant 0 : i32
    return %c0_i32, %c0_i32_0 : i32, i32
  }
  func.func @transform_2(%arg0: i32) -> (i32, i32) {
    %c0_i32 = arith.constant 0 : i32
    %c0_i32_0 = arith.constant 0 : i32
    %c0_i32_1 = arith.constant 0 : i32
    return %c0_i32, %c0_i32_0 : i32, i32
  }
  func.func @transform_3(%arg0: i32) -> (i32, i32) {
    %c0_i32 = arith.constant 0 : i32
    %c0_i32_0 = arith.constant 0 : i32
    %c0_i32_1 = arith.constant 0 : i32
    return %c0_i32, %c0_i32_0 : i32, i32
  }
  func.func @transform_4(%arg0: i32) -> (i32, i32) {
    %c0_i32 = arith.constant 0 : i32
    %c0_i32_0 = arith.constant 0 : i32
    %c0_i32_1 = arith.constant 0 : i32
    return %c0_i32, %c0_i32_0 : i32, i32
  }
  func.func @transform_5(%arg0: i32) -> (i32, i32) {
    %c0_i32 = arith.constant 0 : i32
    %c0_i32_0 = arith.constant 0 : i32
    return %arg0, %c0_i32 : i32, i32
  }
}

</mosaic_0001>

<bundles_post_ra>
// kernel: tpu_custom_call.1
= control target key start
LH: loop header
LB: loop body
LE: loop exit
PB: predicated region body
PF: predicated region fallthrough
CT: control target
= control target key end

     0   :  { %7 = vsyncpa [#allocation3], 0  ;;  %s431_s0 = inlined_call_operand.hbm [shape: f32[8,128], index: 0, kind: input, shape index: {}]   ;;  %s432_s1 = inlined_call_operand.hbm [shape: f32[8,128], index: 1, kind: input, shape index: {}]   ;;  %s433_s2 = inlined_call_operand.hbm [shape: f32[8,128], index: 2, kind: output, shape index: {}]  }
   0x1   :  { %8 = vsyncpa [#allocation6], 0 }
   0x2   :  { %9 = vsyncpa [#allocation4], 0  ;;  %s357_s9 = smov 0  }
   0x3 LB: > { %s196_s10 = sadd.s32 4294967295, %s337_s9   ;;  %p197_p0 = scmp.ge.s32.totalorder %s337_s9, 1  ;;  %s337_s9 = sphi %s357_s9, %s15_s9  }
   0x4   : > { %p83_p1 = scmp.lt.s32.totalorder %s337_s9, 3  ;;  %p367_p2 = scmp.eq.s32.totalorder %s196_s10, 0 }
   0x5   : > { %s339_s13 = smov [#allocation2]   ;;  %s340_s15 = smov [#allocation5]  }
   0x6   : > { %s437_s11 = scalar_select %p367_p2, 1, 0 }
   0x7   : > { %p371_p3 = pnand %p197_p0, %p83_p1  ;;  %s96_s14 = sshll.u32 %s339_s13, 4  ;;  %s97_s14 = int_to_ptr.vmem [resolvable:$true] %s96_s14 }
   0x8   : > { %s107_s16 = sshll.u32 %s340_s15, 4  ;;  %s254_s18 = scalar_lea.vmem %s97_s14, 128  ;;  %s108_s16 = int_to_ptr.vmem [resolvable:$true] %s107_s16 }
   0x9   : > { %s438_s12 = scalar_select %p371_p3, 1, 0 }
   0xa   : > { %p219_p4 = pneg %p371_p3  ;;  %p255_p7 = scmp.ne.s32.totalorder %s97_s14, %s254_s18 }
   0xb   : > { %p262_p10 = scmp.lt.s32.totalorder %s97_s14, %s97_s14  ;;  %p263_p11 = scmp.lt.s32.totalorder %s254_s18, %s254_s18 }
   0xc   : > { %p379_p5 = pnand %p367_p2, %p219_p4 }
   0xd   : > { %p264_p12 = por %p263_p11, %p262_p10 }
   0xe   : > { %p245_p6 = pneg %p379_p5 }
  0x10   : > { %p257_p8 = pnand %p255_p7, %p245_p6 }
  0x12   : > { %p258_p9 = pneg %p257_p8 }
  0x14   : > { %p265_p13 = pnand %p264_p12, %p258_p9 }
  0x16   : > { %268 = shalt.err (!%p265_p13)
}
  0x17   : > { %222 = dma.hbm_to_vmem [thread:$0]  (!%p379_p5), %s431_s0, 128, %s97_s14, [#allocation3]  }
  0x18   : > { %s280_s21 = scalar_lea.vmem %s108_s16, 128  ;;  %p288_p7 = scmp.lt.s32.totalorder %s108_s16, %s108_s16 }
  0x19   : > { %p281_p0 = scmp.ne.s32.totalorder %s108_s16, %s280_s21  ;;  %p289_p8 = scmp.lt.s32.totalorder %s280_s21, %s280_s21 }
  0x1b   : > { %p283_p1 = pnand %p281_p0, %p245_p6  ;;  %p290_p2 = por %p289_p8, %p288_p7 }
  0x1d   : > { %p284_p4 = pneg %p283_p1 }
  0x1f   : > { %p291_p3 = pnand %p290_p2, %p284_p4 }
  0x21   : > { %294 = shalt.err (!%p291_p3)
}
  0x22   : > { %225 = dma.hbm_to_vmem [thread:$0]  (!%p379_p5), %s432_s1, 128, %s108_s16, [#allocation6]  }
  0x23   : > { %p440_p9 = scmp.ne.s32.totalorder %s438_s12, 0 }
  0x24   : > { %p441_p10 = scmp.ne.s32.totalorder (!%p440_p9), %s437_s11, 0 }
  0x25   : > { %120 = sbr.rel (%p440_p9) target bundleno = 60 (0x3c), region = 28 }
  0x2a   : > { %324 = dma.done.wait (%p441_p10), [#allocation3], 128  }
  0x2b   : > { %326 = vsyncadd (%p441_p10), [#allocation3], 4294967168 }
  0x2c   : > { %328 = dma.done.wait (%p441_p10), [#allocation6], 128  }
  0x2d   : > { %330 = vsyncadd (%p441_p10), [#allocation6], 4294967168  ;;  %s341_s24 = smov [#allocation7]   ;;  %v136_v0 = vld [vmem:[#allocation2] sm:$0xff]  ;;  %v137_v1 = vld [vmem:[#allocation5] sm:$0xff]  ;;  %p413_p2 = scmp.eq.s32.totalorder %s196_s10, 1 }
  0x2e   : > { %s147_s25 = sshll.u32 %s341_s24, 4  ;;  %v138_v2 = vadd.f32 %v137_v1, %v136_v0  ;;  %s148_s25 = int_to_ptr.vmem [resolvable:$true] %s147_s25 }
  0x2f   : > { %s295_s27 = scalar_lea.vmem %s148_s25, 128  ;;  %p302_p11 = scmp.lt.s32.totalorder %s148_s25, %s148_s25 }
  0x30   : > { %139 = vst [vmem:[#allocation7] sm:$0xff] %v138_v2  ;;  %p296_p3 = scmp.ne.s32.totalorder %s148_s25, %s295_s27  ;;  %p303_p12 = scmp.lt.s32.totalorder %s295_s27, %s295_s27 }
  0x32   : > { %p297_p5 = pnand %p296_p3, %p413_p2  ;;  %p304_p13 = por %p303_p12, %p302_p11 }
  0x34   : > { %p298_p6 = pneg %p297_p5 }
  0x36   : > { %p305_p0 = pnand %p304_p13, %p298_p6 }
  0x38   : > { %308 = shalt.err (!%p305_p0)
}
  0x39   : > { %216 = dma.vmem_to_hbm [thread:$0]  (%p413_p2), %s148_s25, 128, %s433_s2, [#allocation4]  }
  0x3a   : > { %332 = dma.done.wait (%p413_p2), [#allocation4], 128  }
  0x3b   : > { %334 = vsyncadd (%p413_p2), [#allocation4], 4294967168 }
  0x3c PF: > { %s15_s9 = sadd.s32 1, %s337_s9  }
  0x3d   : > { %p12_p1 = scmp.ge.s32.totalorder %s15_s9, 4  }
  0x3f   :  { %14 = sbr.rel (!%p12_p1) target bundleno = 3 (0x3), region = 61 }
  0x44   :  { %160 = vsyncpa [#allocation3], 1 }
  0x45   :  { %162 = vsyncpa [#allocation3 + $0x1], 1 }
  0x46   :  { %163 = vsyncpa [#allocation6], 1 }
  0x47   :  { %164 = vsyncpa [#allocation4], 1 }
  0x48   :  { %166 = vsyncpa [#allocation4 + $0x1], 1 }

// kernel: _mlp_forward.1
= control target key start
LH: loop header
LB: loop body
LE: loop exit
PB: predicated region body
PF: predicated region fallthrough
CT: control target
= control target key end

     0   :  { %v334_v1 = vmov 0.0   ;;  %vm335_vm0 = vmmov 0   ;;  %vm52_vm1 = vcmask 261120   ;;  %s414_s0 = inlined_call_operand.vmem [shape: bf16[16,32], index: 0, kind: input, shape index: {}]   ;;  %s415_s1 = inlined_call_operand.vmem [shape: bf16[32,128], index: 1, kind: input, shape index: {}]   ;;  %s416_s2 = inlined_call_operand.vmem [shape: f32[1,128], index: 2, kind: input, shape index: {}]   ;;  %s417_s3 = inlined_call_operand.vmem [shape: bf16[128,32], index: 3, kind: input, shape index: {}]   ;;  %s418_s4 = inlined_call_operand.vmem [shape: f32[1,32], index: 4, kind: input, shape index: {}]   ;;  %s419_s5 = inlined_call_operand.hbm [shape: f32[16,32], index: 5, kind: output, shape index: {}]  }
   0x1   :  { %v297_v0 = vld [vmem:[%s415_s1 + $0x8] sm:$0xff]   ;;  %264 = vmatprep.subr.bf16.mxu0 %v334_v1  ;;  %272 = vmatprep.subr.bf16.mxu1 %v334_v1  ;;  %v298_v2 = vld [vmem:[%s415_s1] sm:$0xff]   ;;  %v300_v3 = vld [vmem:[%s417_s3 + $0x38] sm:$0xff]  }
   0x2   :  { %265 = vmatpush3.bf16.msra.mxu0 %v297_v0  ;;  %268 = vmatprep.mubr.msk.bf16.mxu0 %vm335_vm0, %v334_v1  ;;  %v299_v4 = vld [vmem:[%s414_s0] sm:$0xff]  }
   0x3   :  { %266 = vmatprep.subr.bf16.mxu0 %v334_v1  ;;  %288 = vmatprep.mubr.msk.bf16.mxu1 %vm335_vm0, %v334_v1 }
   0x4   :  { %273 = vmatpush3.bf16.msra.mxu1 %v300_v3 }
   0x5   :  { %274 = vmatprep.subr.bf16.mxu1 %v334_v1 }
   0x6   :  { %267 = vmatpush3.bf16.msra.mxu0 %v298_v2 }
   0x9   :  { %269 = vmatmul.mubr.msk.bf16.vlgmr.msra.gmra.mxu0 %vm52_vm1, %v299_v4 }
   0xa   :  { %10 = vsyncpa [#allocation3], 0  ;;  %v301_v5 = vld [vmem:[%s417_s3 + $0x30] sm:$0xff]   ;;  %v302_v6 = vld [vmem:[%s417_s3 + $0x28] sm:$0xff]   ;;  %s336_s15 = smov [#allocation2]  }
   0xb   :  { %275 = vmatpush3.bf16.msra.mxu1 %v301_v5  ;;  %v303_v7 = vld [vmem:[%s417_s3 + $0x20] sm:$0xff]   ;;  %v304_v8 = vld [vmem:[%s417_s3 + $0x18] sm:$0xff]   ;;  %v305_v9 = vld [vmem:[%s417_s3 + $0x10] sm:$0xff]   ;;  %s227_s16 = sshll.u32 %s336_s15, 4  ;;  %s228_s16 = int_to_ptr.vmem [resolvable:$true] %s227_s16 }
   0xc   :  { %276 = vmatprep.subr.bf16.mxu1 %v334_v1  ;;  %v306_v10 = vld [vmem:[%s417_s3 + $0x8] sm:$0xff]   ;;  %v307_v11 = vld [vmem:[%s417_s3] sm:$0xff]   ;;  %s312_s17 = scalar_lea.vmem %s228_s16, 256  ;;  %p317_p1 = scmp.lt.s32.totalorder %s228_s16, %s228_s16 }
   0xd   :  { %v238_v12 = vld [vmem:[%s416_s2] ss:$0 sm:$0xff]  ;;  %p313_p0 = scmp.ne.s32.totalorder %s228_s16, %s312_s17  ;;  %p318_p2 = scmp.lt.s32.totalorder %s312_s17, %s312_s17 }
   0xe   :  { %v243_v30 = vld [vmem:[%s418_s4] ss:$0 sm:$0xff] }
   0xf   :  { %277 = vmatpush3.bf16.msra.mxu1 %v302_v6  ;;  %p319_p3 = por %p318_p2, %p317_p1 }
  0x10   :  { %278 = vmatprep.subr.bf16.mxu1 %v334_v1 }
  0x11   :  { %p320_p4 = pnand %p319_p3, %p313_p0 }
  0x13   :  { %279 = vmatpush3.bf16.msra.mxu1 %v303_v7 }
  0x14   :  { %280 = vmatprep.subr.bf16.mxu1 %v334_v1 }
  0x17   :  { %281 = vmatpush3.bf16.msra.mxu1 %v304_v8 }
  0x18   :  { %282 = vmatprep.subr.bf16.mxu1 %v334_v1 }
  0x1b   :  { %283 = vmatpush3.bf16.msra.mxu1 %v305_v9 }
  0x1c   :  { %284 = vmatprep.subr.bf16.mxu1 %v334_v1 }
  0x1f   :  { %285 = vmatpush3.bf16.msra.mxu1 %v306_v10 }
  0x20   :  { %286 = vmatprep.subr.bf16.mxu1 %v334_v1 }
  0x23   :  { %287 = vmatpush3.bf16.msra.mxu1 %v307_v11 }
  0xc9   :  { %v90_v13 = vpop.f32.mrf.mxu0 }
  0xca   :  { %v91_v14 = vadd.f32 %v238_v12, %v90_v13 }
  0xcb   :  { %v270_v15 = vpop.f32.mrf.mxu0 }
  0xcc   :  { %v99_v16 = vmul.f32 0.70710677, %v91_v14  ;;  %v97_v24 = vmul.f32 0.5, %v91_v14 }
  0xcd   :  { %v93_v17 = vpop.f32.mrf.mxu0 }
  0xce   :  { %308 = verf.f32 %v99_v16  ;;  %v94_v18 = vadd.f32 %v238_v12, %v93_v17 }
  0xcf   :  { %v271_v19 = vpop.f32.mrf.mxu0 }
  0xd0   :  { %v100_v20 = vmul.f32 0.70710677, %v94_v18  ;;  %v98_v25 = vmul.f32 0.5, %v94_v18 }
  0xd2   :  { %310 = verf.f32 %v100_v20 }
  0xdb   :  { %v309_v21 = vpop.eup %308 }
  0xdc   :  { %v103_v22 = vadd.f32 1.0, %v309_v21 }
  0xde   :  { %v105_v27 = vmul.f32 %v103_v22, %v97_v24 }
  0xdf   :  { %v311_v23 = vpop.eup %310 }
  0xe0   :  { %v104_v26 = vadd.f32 1.0, %v311_v23 }
  0xe2   :  { %v106_v28 = vmul.f32 %v104_v26, %v98_v25 }
  0xe4   :  { %v107_v29 = vpack.c.bf16 %v106_v28, %v105_v27 }
  0xe6   :  { %289 = vmatmul.mubr.bf16.vlgmr.msra.gmra.mxu1 %v107_v29 }
 0x1a6   :  { %v213_v31 = vpop.f32.mrf.mxu1 }
 0x1a7   :  { %v214_v32 = vadd.f32 %v243_v30, %v213_v31 }
 0x1a8   :  { %v290_v33 = vpop.f32.mrf.mxu1 }
 0x1a9   :  { %220 = vst.msk [vmem:[#allocation2] sm:$0xff] %vm52_vm1, %v214_v32 }
 0x1aa   :  { %v216_v34 = vpop.f32.mrf.mxu1 }
 0x1ab   :  { %v217_v35 = vadd.f32 %v243_v30, %v216_v34 }
 0x1ac   :  { %v291_v36 = vpop.f32.mrf.mxu1 }
 0x1ad   :  { %221 = vst.msk [vmem:[#allocation2 + $0x8] sm:$0xff] %vm52_vm1, %v217_v35 }
 0x1ae   :  { %323 = shalt.err (!%p320_p4)
}
 0x1af   :  { %s337_s4 = smov 128   ;;  %s338_s18 = smov 8  }
 0x1b0   :  { %233 = dma.vmem_to_hbm [thread:$0]  %s228_s16, 256, %s419_s5, [#allocation3], %s337_s4, %s337_s4, %s338_s18  }
 0x1b1   :  { %332 = dma.done.wait [#allocation3], 256  }
 0x1b2   :  { %333 = vsyncadd [#allocation3], 4294967040 }
 0x1b3   :  { %237 = vsyncpa [#allocation3], 1 }

</bundles_post_ra>
